<compile_context>
chip_gen: v7x
topology: tpu7x:2x2x1
jax: 0.10.0
libtpu: 0.0.40
codegen_flags: <defaults>
</compile_context>

<pallas_src>
import jax
import jax.numpy as jnp
from jax.experimental import pallas as pl
from jax.experimental.pallas import tpu as pltpu


def _round_up(x, m):
    return (x + m - 1) // m * m


def _cdiv(a, b):
    return -(-a // b)


# ---------------------------------------------------------------------------
# Kernel
# ---------------------------------------------------------------------------
def _disc_kernel(x_ref, w1_ref, b1_ref, w2_ref, b2_ref, w3_ref, b3_ref,
                 out_ref, feat_ref, acc_ref):
    """One (batch-tile i, K-tile k) grid step of the fused discriminator."""
    k = pl.program_id(1)

    @pl.when(k == 0)
    def _():
        acc_ref[...] = jnp.zeros_like(acc_ref)

    # l1 chunk: relu(x @ W1[:, k] + b1[k]).  x is cast to bf16 on the VPU,
    # tile-locally (no padded/cast HBM copy of x in the wrapper).
    x = x_ref[...].astype(jnp.bfloat16)                              # (TB, D)
    h1 = jnp.dot(x, w1_ref[...], preferred_element_type=jnp.float32)
    h1 = jnp.maximum(h1 + b1_ref[...], 0.0)                          # (TB, tk) f32

    # l2 partial: accumulate h1-chunk @ W2[k, :] into the f32 scratch (MXU).
    acc_ref[...] += jnp.dot(h1.astype(jnp.bfloat16), w2_ref[...],
                            preferred_element_type=jnp.float32)

    @pl.when(k == pl.num_programs(1) - 1)
    def _():
        feat = jnp.maximum(acc_ref[...] + b2_ref[...], 0.0)          # (TB, Hp) f32
        # l3 (N=1): VPU multiply + XLU lane reduction instead of a wasted
        # 1-column MXU pass; b3 is a scalar in SMEM.
        logits = jnp.sum(feat * w3_ref[...], axis=-1, keepdims=True) + b3_ref[0]
        out_ref[...] = jax.nn.sigmoid(logits).astype(out_ref.dtype)  # (TB, 1)
        feat_ref[...] = feat.astype(feat_ref.dtype)                  # bf16 writeback


# ---------------------------------------------------------------------------
# Wrapper
# ---------------------------------------------------------------------------
def prepare_params(params):
    """One-time layout prep (hoisted out of the per-call path): pad the hidden
    dim to a lane/MXU-friendly multiple and cast matmul weights to bf16.
    Padding is exact: padded columns stay 0 through ReLU and contribute 0 to
    the final reduction."""
    w1, b1, w2, b2, w3, b3 = params
    D, H = w1.shape
    # 256-multiple padding fills the v6e/v7x 2x256^2 MXUs once H is large
    # enough that the overhead is small; otherwise 128 (v5e-native, minimal pad).
    Hp = _round_up(H, 256) if H >= 192 else _round_up(H, 128)

    w1p = jnp.zeros((D, Hp), jnp.bfloat16).at[:, :H].set(w1.astype(jnp.bfloat16))
    w2p = jnp.zeros((Hp, Hp), jnp.bfloat16).at[:H, :H].set(w2.astype(jnp.bfloat16))
    b1p = jnp.zeros((1, Hp), jnp.float32).at[:, :H].set(
        b1.reshape(1, H).astype(jnp.float32))
    b2p = jnp.zeros((1, Hp), jnp.float32).at[:, :H].set(
        b2.reshape(1, H).astype(jnp.float32))
    w3p = jnp.zeros((1, Hp), jnp.float32).at[:, :H].set(
        w3.reshape(1, H).astype(jnp.float32))
    b3p = b3.reshape(1).astype(jnp.float32)
    return dict(w1=w1p, b1=b1p, w2=w2p, b2=b2p, w3=w3p, b3=b3p,
                D=D, H=H, Hp=Hp)


def _pick_batch_tile(B, requested):
    """Multiple-of-16 batch tile; >=2 grid steps when the batch allows so both
    v7x TensorCores get work, with minimal batch padding."""
    requested = max(16, min(int(requested), 1024))
    n_tiles = max(1, _cdiv(B, requested))
    if B > 128:
        n_tiles = max(n_tiles, 2)
    return _round_up(_cdiv(B, n_tiles), 16)


def _pick_k_tile(Hp):
    for cand in (512, 256, 128):
        if Hp % cand == 0:
            return cand
    return Hp  # unreachable: Hp is always a multiple of 128


def _vmem_limit_bytes(tb, D, Hp, tk):
    blk = (2 * tb * D * 4          # x tiles (f32, double-buffered)
           + 2 * D * tk * 2        # W1 k-slices (bf16)
           + 2 * 8 * tk * 4        # b1 k-slices (sublane-padded)
           + 2 * tk * Hp * 2       # W2 k-slices (bf16)
           + 2 * 2 * 8 * Hp * 4    # b2, w3 rows
           + 2 * tb * Hp * 2       # feat out tiles (bf16)
           + 2 * tb * 128 * 4      # sigmoid out tiles (lane-padded)
           + tb * Hp * 4)          # f32 accumulator scratch
    # Scale the scoped-VMEM limit with the working set: floor 32 MiB, cap
    # ~100 MiB (v5e/v6e have 128 MiB physical; on v7x the K-tiling keeps the
    # working set well under the 64 MiB physical cap anyway).
    return int(min(max(blk + (4 << 20), 32 << 20), 100 << 20))


def discriminator_forward(x, prepared, *, tile_b=512, feat_dtype=jnp.bfloat16):
    """x: [B, data_dim] f32.  prepared: output of prepare_params().

    Returns (out [B, 1] f32, feat [B, hidden] feat_dtype)."""
    B, D = x.shape
    assert D == prepared["D"], "data_dim mismatch with prepared params"
    H, Hp = prepared["H"], prepared["Hp"]

    tb = _pick_batch_tile(B, tile_b)
    tk = _pick_k_tile(Hp)
    nb = _cdiv(B, tb)
    nk = Hp // tk
    Bp = nb * tb

    # Row-pad only when needed; dtype stays f32 (cast happens in-kernel).
    xp = x if Bp == B else jnp.pad(x, ((0, Bp - B), (0, 0)))

    out, feat = pl.pallas_call(
        _disc_kernel,
        out_shape=(
            jax.ShapeDtypeStruct((Bp, 1), jnp.float32),
            jax.ShapeDtypeStruct((Bp, Hp), feat_dtype),   # bf16: halves dominant writeback
        ),
        grid_spec=pltpu.PrefetchScalarGridSpec(
            num_scalar_prefetch=0,
            grid=(nb, nk),                                # reduction (k) axis last
            in_specs=[
                pl.BlockSpec((tb, D), lambda i, k: (i, 0)),       # x (f32)
                pl.BlockSpec((D, tk), lambda i, k: (0, k)),       # W1 k-slice (bf16)
                pl.BlockSpec((1, tk), lambda i, k: (0, k)),       # b1 k-slice
                pl.BlockSpec((tk, Hp), lambda i, k: (k, 0)),      # W2 k-slice (bf16)
                pl.BlockSpec((1, Hp), lambda i, k: (0, 0)),       # b2
                pl.BlockSpec((1, Hp), lambda i, k: (0, 0)),       # w3 row
                pl.BlockSpec(memory_space=pltpu.MemorySpace.SMEM),  # b3 scalar
            ],
            out_specs=[
                pl.BlockSpec((tb, 1), lambda i, k: (i, 0)),       # sigmoid out
                pl.BlockSpec((tb, Hp), lambda i, k: (i, 0)),      # feat (lane-dense)
            ],
            scratch_shapes=[pltpu.VMEM((tb, Hp), jnp.float32)],   # l2 accumulator
        ),
        compiler_params=pltpu.CompilerParams(
            dimension_semantics=("parallel", "arbitrary"),        # batch over TCs, K serial
            vmem_limit_bytes=_vmem_limit_bytes(tb, D, Hp, tk),
        ),
    )(xp, prepared["w1"], prepared["b1"], prepared["w2"], prepared["b2"],
      prepared["w3"], prepared["b3"])

    return out[:B], feat[:B, :H]


# ---------------------------------------------------------------------------
# Init + reference
# ---------------------------------------------------------------------------
def init_params(key, data_dim, hidden_size):
    """Deterministic init mimicking PyTorch Linear's U(-1/sqrt(fan_in), +)."""
    ks = jax.random.split(key, 6)

    def lin(kw, kb, fan_in, fan_out):
        bound = 1.0 / (fan_in ** 0.5)
        # stored already transposed: [in, out]
        w = jax.random.uniform(kw, (fan_in, fan_out), jnp.float32, -bound, bound)
        b = jax.random.uniform(kb, (fan_out,), jnp.float32, -bound, bound)
        return w, b

    w1, b1 = lin(ks[0], ks[1], data_dim, hidden_size)
    w2, b2 = lin(ks[2], ks[3], hidden_size, hidden_size)
    w3, b3 = lin(ks[4], ks[5], hidden_size, 1)
    return (w1, b1, w2, b2, w3, b3)


def reference_forward(x, params):
    """Pure-JAX reference reproducing the kernel's numerics (bf16 matmul
    inputs, f32 accumulation; feat compared in f32)."""
    w1, b1, w2, b2, w3, b3 = params
    hi = jax.lax.Precision.HIGHEST
    f32 = jnp.float32
    xb = x.astype(jnp.bfloat16).astype(f32)
    h1 = jnp.maximum(
        jnp.dot(xb, w1.astype(jnp.bfloat16).astype(f32), precision=hi) + b1, 0.0)
    h1b = h1.astype(jnp.bfloat16).astype(f32)
    feat = jnp.maximum(
        jnp.dot(h1b, w2.astype(jnp.bfloat16).astype(f32), precision=hi) + b2, 0.0)
    out = jax.nn.sigmoid(jnp.dot(feat, w3, precision=hi) + b3)
    return out, feat


if __name__ == "__main__":
    key = jax.random.PRNGKey(0)
    data_dim, hidden_size, batch = 16, 32, 200   # small demo shapes

    k_x, k_p = jax.random.split(key)
    x = jax.random.normal(k_x, (batch, data_dim), jnp.float32)
    params = init_params(k_p, data_dim, hidden_size)

    prepared = prepare_params(params)            # one-time layout prep
    out, feat = discriminator_forward(x, prepared)
    jax.block_until_ready((out, feat))

    ref_out, ref_feat = reference_forward(x, params)
    assert out.shape == (batch, 1) and feat.shape == (batch, hidden_size)
    assert jnp.allclose(out, ref_out, atol=2e-3, rtol=2e-3)
    # feat is written back in bf16 -> compare with bf16-level tolerance.
    assert jnp.allclose(feat.astype(jnp.float32), ref_feat, atol=2e-2, rtol=2e-2)

    print("KERNEL_OK")
</pallas_src>

<mosaic_0001>
module attributes {stable_mosaic.version = 11 : i64} {
  func.func @_disc_kernel(%arg0: i32, %arg1: i32, %arg2: memref<112x16xf32, #tpu.memory_space<vmem>>, %arg3: memref<16x128xbf16, #tpu.memory_space<vmem>>, %arg4: memref<1x128xf32, #tpu.memory_space<vmem>>, %arg5: memref<128x128xbf16, #tpu.memory_space<vmem>>, %arg6: memref<1x128xf32, #tpu.memory_space<vmem>>, %arg7: memref<1x128xf32, #tpu.memory_space<vmem>>, %arg8: memref<1xf32, #tpu.memory_space<smem>>, %arg9: memref<112x1xf32, #tpu.memory_space<vmem>>, %arg10: memref<112x128xbf16, #tpu.memory_space<vmem>>, %arg11: memref<112x128xf32, #tpu.memory_space<vmem>>) attributes {dimension_semantics = [#tpu.dimension_semantics<parallel>, #tpu.dimension_semantics<arbitrary>], iteration_bounds = array<i64: 2, 1>, scalar_prefetch = 0 : i64, scratch_operands = 1 : i64, tpu.core_type = #tpu.core_type<tc>, window_params = [{transform_indices = @transform_0, window_bounds = array<i64: 112, 16>}, {transform_indices = @transform_1, window_bounds = array<i64: 16, 128>}, {transform_indices = @transform_2, window_bounds = array<i64: 1, 128>}, {transform_indices = @transform_3, window_bounds = array<i64: 128, 128>}, {pipeline_mode = #tpu.pipeline_mode<synchronous>, transform_indices = @transform_4, window_bounds = array<i64: 1, 128>}, {pipeline_mode = #tpu.pipeline_mode<synchronous>, transform_indices = @transform_5, window_bounds = array<i64: 1, 128>}, {transform_indices = @transform_6, window_bounds = array<i64: 1>}, {transform_indices = @transform_7, window_bounds = array<i64: 112, 1>}, {transform_indices = @transform_8, window_bounds = array<i64: 112, 128>}]} {
    %c0_i32 = arith.constant 0 : i32
    %0 = arith.cmpi eq, %arg1, %c0_i32 : i32
    %1 = arith.extui %0 : i1 to i32
    %c0_i32_0 = arith.constant 0 : i32
    %2 = arith.cmpi ne, %1, %c0_i32_0 : i32
    scf.if %2 {
      %cst_16 = arith.constant 0.000000e+00 : f32
      %21 = vector.broadcast %cst_16 : f32 to vector<112x128xf32>
      %c0_17 = arith.constant 0 : index
      %c0_18 = arith.constant 0 : index
      %22 = vector.load %arg11[%c0_17, %c0_18] : memref<112x128xf32, #tpu.memory_space<vmem>>, vector<112x128xf32>
      tpu.vector_store %arg11[%c0_17, %c0_18], %21 {strides = array<i32>} : memref<112x128xf32, #tpu.memory_space<vmem>>, vector<112x128xf32>,
    } else {
    }
    %c0 = arith.constant 0 : index
    %c0_1 = arith.constant 0 : index
    %3 = vector.load %arg2[%c0, %c0_1] : memref<112x16xf32, #tpu.memory_space<vmem>>, vector<112x16xf32>
    %4 = arith.truncf %3 : vector<112x16xf32> to vector<112x16xbf16>
    %c0_2 = arith.constant 0 : index
    %c0_3 = arith.constant 0 : index
    %5 = vector.load %arg3[%c0_2, %c0_3] : memref<16x128xbf16, #tpu.memory_space<vmem>>, vector<16x128xbf16>
    %cst = arith.constant dense<0.000000e+00> : vector<112x128xf32>
    %6 = tpu.matmul %4, %5, %cst {dimension_numbers = #tpu.dot_dimension_numbers<[1], [0], [0], [1], [0, 0, 1, 1], [], []>} : vector<112x16xbf16>, vector<16x128xbf16>, vector<112x128xf32> -> vector<112x128xf32>
    %c0_4 = arith.constant 0 : index
    %c0_5 = arith.constant 0 : index
    %7 = vector.load %arg4[%c0_4, %c0_5] : memref<1x128xf32, #tpu.memory_space<vmem>>, vector<1x128xf32>
    %8 = vector.broadcast %7 : vector<1x128xf32> to vector<112x128xf32>
    %9 = arith.addf %6, %8 : vector<112x128xf32>
    %cst_6 = arith.constant 0.000000e+00 : f32
    %10 = vector.broadcast %cst_6 : f32 to vector<112x128xf32>
    %11 = arith.maximumf %9, %10 : vector<112x128xf32>
    %c0_7 = arith.constant 0 : index
    %c0_8 = arith.constant 0 : index
    %12 = vector.load %arg11[%c0_7, %c0_8] : memref<112x128xf32, #tpu.memory_space<vmem>>, vector<112x128xf32>
    %13 = arith.truncf %11 : vector<112x128xf32> to vector<112x128xbf16>
    %c0_9 = arith.constant 0 : index
    %c0_10 = arith.constant 0 : index
    %14 = vector.load %arg5[%c0_9, %c0_10] : memref<128x128xbf16, #tpu.memory_space<vmem>>, vector<128x128xbf16>
    %cst_11 = arith.constant dense<0.000000e+00> : vector<112x128xf32>
    %15 = tpu.matmul %13, %14, %cst_11 {dimension_numbers = #tpu.dot_dimension_numbers<[1], [0], [0], [1], [0, 0, 1, 1], [], []>} : vector<112x128xbf16>, vector<128x128xbf16>, vector<112x128xf32> -> vector<112x128xf32>
    %16 = arith.addf %12, %15 : vector<112x128xf32>
    %c0_12 = arith.constant 0 : index
    %c0_13 = arith.constant 0 : index
    %17 = vector.load %arg11[%c0_12, %c0_13] : memref<112x128xf32, #tpu.memory_space<vmem>>, vector<112x128xf32>
    tpu.vector_store %arg11[%c0_12, %c0_13], %16 {strides = array<i32>} : memref<112x128xf32, #tpu.memory_space<vmem>>, vector<112x128xf32>,
    %c0_i32_14 = arith.constant 0 : i32
    %18 = arith.cmpi eq, %arg1, %c0_i32_14 : i32
    %19 = arith.extui %18 : i1 to i32
    %c0_i32_15 = arith.constant 0 : i32
    %20 = arith.cmpi ne, %19, %c0_i32_15 : i32
    scf.if %20 {
      %c0_16 = arith.constant 0 : index
      %c0_17 = arith.constant 0 : index
      %21 = vector.load %arg11[%c0_16, %c0_17] : memref<112x128xf32, #tpu.memory_space<vmem>>, vector<112x128xf32>
      %c0_18 = arith.constant 0 : index
      %c0_19 = arith.constant 0 : index
      %22 = vector.load %arg6[%c0_18, %c0_19] : memref<1x128xf32, #tpu.memory_space<vmem>>, vector<1x128xf32>
      %23 = vector.broadcast %22 : vector<1x128xf32> to vector<112x128xf32>
      %24 = arith.addf %21, %23 : vector<112x128xf32>
      %cst_20 = arith.constant 0.000000e+00 : f32
      %25 = vector.broadcast %cst_20 : f32 to vector<112x128xf32>
      %26 = arith.maximumf %24, %25 : vector<112x128xf32>
      %c0_21 = arith.constant 0 : index
      %c0_22 = arith.constant 0 : index
      %27 = vector.load %arg7[%c0_21, %c0_22] : memref<1x128xf32, #tpu.memory_space<vmem>>, vector<1x128xf32>
      %28 = vector.broadcast %27 : vector<1x128xf32> to vector<112x128xf32>
      %29 = arith.mulf %26, %28 : vector<112x128xf32>
      %cst_23 = arith.constant dense<0.000000e+00> : vector<112xf32>
      %30 = vector.multi_reduction <add>, %29, %cst_23 [1] : vector<112x128xf32> to vector<112xf32>
      %31 = vector.shape_cast %30 : vector<112xf32> to vector<112x1xf32>
      %c0_24 = arith.constant 0 : index
      %32 = memref.load %arg8[%c0_24] : memref<1xf32, #tpu.memory_space<smem>>
      %33 = vector.broadcast %32 : f32 to vector<112x1xf32>
      %34 = arith.addf %31, %33 : vector<112x1xf32>
      %35 = arith.negf %34 : vector<112x1xf32>
      %36 = math.exp %35 : vector<112x1xf32>
      %cst_25 = arith.constant 1.000000e+00 : f32
      %37 = vector.broadcast %cst_25 : f32 to vector<112x1xf32>
      %38 = arith.addf %37, %36 : vector<112x1xf32>
      %39 = arith.divf %37, %38 : vector<112x1xf32>
      %c0_26 = arith.constant 0 : index
      %c0_27 = arith.constant 0 : index
      %40 = vector.load %arg9[%c0_26, %c0_27] : memref<112x1xf32, #tpu.memory_space<vmem>>, vector<112x1xf32>
      tpu.vector_store %arg9[%c0_26, %c0_27], %39 {strides = array<i32>} : memref<112x1xf32, #tpu.memory_space<vmem>>, vector<112x1xf32>,
      %41 = arith.truncf %26 : vector<112x128xf32> to vector<112x128xbf16>
      %c0_28 = arith.constant 0 : index
      %c0_29 = arith.constant 0 : index
      %42 = vector.load %arg10[%c0_28, %c0_29] : memref<112x128xbf16, #tpu.memory_space<vmem>>, vector<112x128xbf16>
      tpu.vector_store %arg10[%c0_28, %c0_29], %41 {strides = array<i32>} : memref<112x128xbf16, #tpu.memory_space<vmem>>, vector<112x128xbf16>,
    } else {
    }
    return
  }
  func.func @transform_0(%arg0: i32, %arg1: i32) -> (i32, i32) {
    %c0_i32 = arith.constant 0 : i32
    %c0_i32_0 = arith.constant 0 : i32
    return %arg0, %c0_i32 : i32, i32
  }
  func.func @transform_1(%arg0: i32, %arg1: i32) -> (i32, i32) {
    %c0_i32 = arith.constant 0 : i32
    %c0_i32_0 = arith.constant 0 : i32
    return %c0_i32, %arg1 : i32, i32
  }
  func.func @transform_2(%arg0: i32, %arg1: i32) -> (i32, i32) {
    %c0_i32 = arith.constant 0 : i32
    %c0_i32_0 = arith.constant 0 : i32
    return %c0_i32, %arg1 : i32, i32
  }
  func.func @transform_3(%arg0: i32, %arg1: i32) -> (i32, i32) {
    %c0_i32 = arith.constant 0 : i32
    %c0_i32_0 = arith.constant 0 : i32
    return %arg1, %c0_i32 : i32, i32
  }
  func.func @transform_4(%arg0: i32, %arg1: i32) -> (i32, i32) {
    %c0_i32 = arith.constant 0 : i32
    %c0_i32_0 = arith.constant 0 : i32
    %c0_i32_1 = arith.constant 0 : i32
    return %c0_i32, %c0_i32_0 : i32, i32
  }
  func.func @transform_5(%arg0: i32, %arg1: i32) -> (i32, i32) {
    %c0_i32 = arith.constant 0 : i32
    %c0_i32_0 = arith.constant 0 : i32
    %c0_i32_1 = arith.constant 0 : i32
    return %c0_i32, %c0_i32_0 : i32, i32
  }
  func.func @transform_6(%arg0: i32, %arg1: i32) -> i32 {
    %c0_i32 = arith.constant 0 : i32
    %c0_i32_0 = arith.constant 0 : i32
    return %c0_i32 : i32
  }
  func.func @transform_7(%arg0: i32, %arg1: i32) -> (i32, i32) {
    %c0_i32 = arith.constant 0 : i32
    %c0_i32_0 = arith.constant 0 : i32
    return %arg0, %c0_i32 : i32, i32
  }
  func.func @transform_8(%arg0: i32, %arg1: i32) -> (i32, i32) {
    %c0_i32 = arith.constant 0 : i32
    %c0_i32_0 = arith.constant 0 : i32
    return %arg0, %c0_i32 : i32, i32
  }
}

</mosaic_0001>

<bundles_post_ra>
// kernel: tpu_custom_call.1
= control target key start
LH: loop header
LB: loop body
LE: loop exit
PB: predicated region body
PF: predicated region fallthrough
CT: control target
= control target key end

     0   :  { %s2038_s0 = inlined_call_operand.vmem [shape: f32[224,16], index: 0, kind: input, shape index: {}]   ;;  %s2039_s1 = inlined_call_operand.vmem [shape: bf16[16,128], index: 1, kind: input, shape index: {}]   ;;  %s2040_s2 = inlined_call_operand.vmem [shape: f32[1,128], index: 2, kind: input, shape index: {}]   ;;  %s2041_s3 = inlined_call_operand.vmem [shape: bf16[128,128], index: 3, kind: input, shape index: {}]   ;;  %s2042_s4 = inlined_call_operand.vmem [shape: f32[1,128], index: 4, kind: input, shape index: {}]   ;;  %s2043_s5 = inlined_call_operand.vmem [shape: f32[1,128], index: 5, kind: input, shape index: {}]   ;;  %s2044_s6 = inlined_call_operand.<no memory space> [shape: f32[1], index: 6, kind: input, shape index: {}]   ;;  %s2045_s7 = inlined_call_operand.vmem [shape: f32[224,1], index: 7, kind: output, shape index: {0}]   ;;  %s2046_s8 = inlined_call_operand.hbm [shape: bf16[224,128], index: 8, kind: output, shape index: {1}]  }
   0x1   :  { %14 = sst [smem:[#allocation3]] %s2044_s6 }
   0x2   :  { %15 = vsyncpa [#allocation5], 0 }
   0x3   :  { %17 = vsyncpa [#allocation5 + $0x1], 0  ;;  %s1702_s29 = smov 0   ;;  %s1704_s30 = smov 0  }
   0x4   :  { %s1706_s9 = smov 0   ;;  %s1708_s10 = smov 0  }
   0x5   :  { %s1710_s11 = smov 0   ;;  %s1712_s12 = smov 0  }
   0x6 LB: > { %s1215_s6 = sadd.s32 4294967295, %s1647_s12   ;;  %s1216_s13 = sadd.s32 4294967294, %s1647_s12   ;;  %s1647_s12 = sphi %s1712_s12, %s23_s12   ;;  %s1643_s11 = sphi %s1710_s11, %s2053_s11   ;;  %s1639_s10 = sphi %s1708_s10, %s2052_s10   ;;  %s1635_s9 = sphi %s1706_s9, %s2051_s9   ;;  %s1631_s30 = sphi %s1704_s30, %s2050_s30   ;;  %s1627_s29 = sphi %s1702_s29, %s2049_s29  }
   0x7   : > { %s35_s14 = sadd.s32 1, %s1643_s11  ;;  %s235_s15 = sadd.s32 1, %s1635_s9 }
   0x8   : > { %p37_p0 = scmp.ge.s32.totalorder %s35_s14, 2  ;;  %p245_p1 = scmp.ne.s32.totalorder %s1635_s9, %s1631_s30 }
   0x9   : > { %p246_p2 = scmp.eq.s32.totalorder %s1215_s6, 1  ;;  %p251_p3 = scmp.ne.s32.totalorder %s1631_s30, %s1627_s29 }
   0xa   : > { %s2055_s14 = smov (%p37_p0, %s35_s14), 0  ;;  %p252_p5 = scmp.eq.s32.totalorder %s1216_s13, 1 }
   0xb   : > { %p1742_p4 = por %p246_p2, %p245_p1  ;;  %s232_s17 = ssub.s32 %s1643_s11, %s2055_s14 }
   0xc   : > { %p1222_p6 = scmp.ge.s32.totalorder %s1647_s12, 1  ;;  %p233_p7 = scmp.eq.s32.totalorder %s232_s17, 0 }
   0xd   : > { %p1749_p8 = por %p252_p5, %p251_p3  ;;  %p310_p9 = scmp.lt.s32.totalorder %s1647_s12, 3 }
   0xe   : > { %s1755_s19 = scalar_select %p233_p7, %s1635_s9, %s235_s15  }
   0xf   : > { %p311_p10 = pnand %p1222_p6, %p310_p9 }
  0x10   : > { %v1504_v0 = vld [vmem:[%s2039_s1] sm:$0xff] (!%p311_p10)   ;;  %v1649_v1 = vmov (!%p311_p10), 0.0   ;;  %s361_s22 = smul.u32 (!%p311_p10), 14, %s1639_s10  ;;  %vm1650_vm0 = vmmov (!%p311_p10), 0   ;;  %v1506_v3 = vld [vmem:[%s2041_s3 + $0x8] sm:$0xff] (!%p311_p10)   ;;  %vm442_vm1 = vcmask (!%p311_p10), 130048  }
  0x11   : > { %314 = sbr.rel (%p311_p10) target bundleno = 689 (0x2b1), region = 48  ;;  %1354 = vmatprep.subr.bf16.mxu0 (!%p311_p10), %v1649_v1  ;;  %v1505_v2 = vld [vmem:[%s2041_s3] sm:$0xff] (!%p311_p10)   ;;  %1428 = vmatprep.subr.bf16.mxu1 (!%p311_p10), %v1649_v1  ;;  %v1507_v6 = vld [vmem:[%s2041_s3 + $0x10] sm:$0xff] (!%p311_p10)   ;;  %v1508_v10 = vld [vmem:[%s2041_s3 + $0x18] sm:$0xff] (!%p311_p10)   ;;  %s358_s24 = sand.u32 (!%p311_p10), 1, %s1631_s30  }
  0x12   : > { %1355 = vmatpush3.bf16.msra.mxu0 (!%p311_p10), %v1504_v0  ;;  %1356 = vmatprep.mubr.msk.bf16.mxu0 (!%p311_p10), %vm1650_vm0, %v1649_v1  ;;  %p362_p11 = scmp.lt.s32.totalorder (!%p311_p10), %s361_s22, 27  ;;  %v1509_v12 = vld [vmem:[%s2041_s3 + $0x20] sm:$0xff] (!%p311_p10)   ;;  %v1510_v15 = vld [vmem:[%s2041_s3 + $0x28] sm:$0xff] (!%p311_p10)   ;;  %v1511_v29 = vld [vmem:[%s2041_s3 + $0x30] sm:$0xff] (!%p311_p10)   ;;  %s1444_s25 = smul.u32 (!%p311_p10), 56, %s358_s24 }
  0x13   : > { %1384 = vmatprep.subr.bf16.mxu0 (!%p311_p10), %v1649_v1  ;;  %1436 = vmatpush3.bf16.msra.mxu1 (!%p311_p10), %v1505_v2  ;;  %v1512_v30 = vld [vmem:[%s2041_s3 + $0x38] sm:$0xff] (!%p311_p10)   ;;  %v1854_v31 = vld [vmem:[%s2040_s2] ss:$0 sm:$0xff] (!%p311_p10)  ;;  %s1289_s15 = smul.u32 (!%p311_p10), 896, %s1639_s10  ;;  %s1941_s23 = scalar_lea.sflag (!%p311_p10), [#allocation5], %s358_s24 }
  0x14   : > { %1429 = vmatprep.subr.bf16.mxu1 (!%p311_p10), %v1649_v1  ;;  %1404 = vmatprep.mubr.msk.bf16.mxu1 (!%p311_p10), %vm1650_vm0, %v1649_v1  ;;  %s1896_s6 = scalar_lea.vmem (!%p311_p10), [#allocation4], %s1444_s25  ;;  %s1651_s10 = smov (!%p311_p10), [#allocation4]  }
  0x15   : > { %s1078_s17 = sshll.u32 (!%p311_p10), %s1896_s6, 4  ;;  %s1935_s21 = scalar_lea.hbm (!%p311_p10), %s2046_s8, %s1289_s15  ;;  %s1937_s17 = int_to_ptr.vmem [resolvable:$true] %s1078_s17 }
  0x16   : > { %s1569_s25 = scalar_lea.vmem (!%p311_p10), %s1937_s17, 896  ;;  %s1573_s26 = sshll.u32 (!%p311_p10), %s1651_s10, 4  ;;  %s1574_s26 = int_to_ptr.vmem [resolvable:$false] %s1573_s26 }
  0x17   : > { %1437 = vmatpush3.bf16.msra.mxu1 (!%p311_p10), %v1506_v3  ;;  %p1570_p12 = scmp.ne.s32.totalorder (!%p311_p10), %s1937_s17, %s1569_s25  ;;  %s1575_s28 = scalar_lea.vmem (!%p311_p10), %s1574_s26, 1792 }
  0x18   : > { %s2057_s22 = smov (!%p362_p11, %s361_s22), 27  ;;  %1430 = vmatprep.subr.bf16.mxu1 %v1649_v1  ;;  %p1576_p1 = scmp.lt.s32.totalorder %s1937_s17, %s1574_s26 }
  0x19   : > { %s1223_s27 = sshll.u32 %s2057_s22, 3  ;;  %p1571_p13 = pnand %p1570_p12, %p1742_p4 }
  0x1a   : > { %s1783_s13 = scalar_lea.vmem %s2038_s0, %s1223_s27  ;;  %p1577_p2 = scmp.lt.s32.totalorder %s1575_s28, %s1569_s25 }
  0x1b   : > { %v406_v4 = vld [vmem:[%s1783_s13] sm:$0xff]  ;;  %v407_v5 = vld [vmem:[%s1783_s13 + $0x8] sm:$0xff]  ;;  %1438 = vmatpush3.bf16.msra.mxu1 %v1507_v6  ;;  %v408_v8 = vld [vmem:[%s1783_s13 + $0x10] sm:$0xff]  ;;  %p1572_p0 = pneg %p1571_p13 }
  0x1c   : > { %v420_v7 = vpack.c.bf16 %v407_v5, %v406_v4  ;;  %1431 = vmatprep.subr.bf16.mxu1 %v1649_v1  ;;  %v409_v9 = vld [vmem:[%s1783_s13 + $0x18] sm:$0xff]  ;;  %v410_v13 = vld [vmem:[%s1783_s13 + $0x20] sm:$0xff]  ;;  %v411_v14 = vld [vmem:[%s1783_s13 + $0x28] sm:$0xff]  ;;  %p1578_p3 = por %p1577_p2, %p1576_p1 }
  0x1d   : > { %v421_v11 = vpack.c.bf16 %v409_v9, %v408_v8  ;;  %v422_v16 = vpack.c.bf16 %v411_v14, %v410_v13  ;;  %v412_v17 = vld [vmem:[%s1783_s13 + $0x30] sm:$0xff]  ;;  %v413_v18 = vld [vmem:[%s1783_s13 + $0x38] sm:$0xff]  ;;  %v414_v20 = vld [vmem:[%s1783_s13 + $0x40] sm:$0xff] }
  0x1e   : > { %1357 = vmatmul.mubr.msk.bf16.vlgmr.msra.gmra.mrb[0].mxu0 %vm442_vm1, %v420_v7  ;;  %v423_v19 = vpack.c.bf16 %v413_v18, %v412_v17  ;;  %v415_v21 = vld [vmem:[%s1783_s13 + $0x48] sm:$0xff]  ;;  %v416_v23 = vld [vmem:[%s1783_s13 + $0x50] sm:$0xff]  ;;  %v417_v24 = vld [vmem:[%s1783_s13 + $0x58] sm:$0xff]  ;;  %p1579_p5 = pnand %p1578_p3, %p1572_p0 }
  0x1f   : > { %1360 = vmatprep.mubr.msk.bf16.mxu0 %vm1650_vm0, %v1649_v1  ;;  %1385 = vmatpush3.bf16.msra.mxu0 %v1505_v2  ;;  %v424_v22 = vpack.c.bf16 %v415_v21, %v414_v20  ;;  %v425_v25 = vpack.c.bf16 %v417_v24, %v416_v23  ;;  %v418_v26 = vld [vmem:[%s1783_s13 + $0x60] sm:$0xff]  ;;  %v419_v27 = vld [vmem:[%s1783_s13 + $0x68] sm:$0xff] }
  0x20   : > { %1386 = vmatprep.subr.bf16.mxu0 %v1649_v1  ;;  %1439 = vmatpush3.bf16.msra.mxu1 %v1508_v10  ;;  %v426_v28 = vpack.c.bf16 %v419_v27, %v418_v26 }
  0x21   : > { %1432 = vmatprep.subr.bf16.mxu1 %v1649_v1 }
  0x23   : > { %1387 = vmatpush3.bf16.msra.mxu0 %v1506_v3 }
  0x24   : > { %1388 = vmatprep.subr.bf16.mxu0 %v1649_v1  ;;  %1440 = vmatpush3.bf16.msra.mxu1 %v1509_v12 }
  0x25   : > { %1433 = vmatprep.subr.bf16.mxu1 %v1649_v1 }
  0x26   : > { %1361 = vmatmul.mubr.msk.bf16.gmra.mrb[4].mxu0 %vm442_vm1, %v421_v11 }
  0x27   : > { %1364 = vmatprep.mubr.msk.bf16.mxu0 %vm1650_vm0, %v1649_v1  ;;  %1389 = vmatpush3.bf16.msra.mxu0 %v1507_v6 }
  0x28   : > { %1390 = vmatprep.subr.bf16.mxu0 %v1649_v1  ;;  %1441 = vmatpush3.bf16.msra.mxu1 %v1510_v15 }
  0x29   : > { %1434 = vmatprep.subr.bf16.mxu1 %v1649_v1 }
  0x2b   : > { %1391 = vmatpush3.bf16.msra.mxu0 %v1508_v10 }
  0x2c   : > { %1392 = vmatprep.subr.bf16.mxu0 %v1649_v1  ;;  %1442 = vmatpush3.bf16.msra.mxu1 %v1511_v29 }
  0x2d   : > { %1435 = vmatprep.subr.bf16.mxu1 %v1649_v1 }
  0x2e   : > { %1365 = vmatmul.mubr.msk.bf16.gmra.mrb[8].mxu0 %vm442_vm1, %v422_v16 }
  0x2f   : > { %1368 = vmatprep.mubr.msk.bf16.mxu0 %vm1650_vm0, %v1649_v1  ;;  %1393 = vmatpush3.bf16.msra.mxu0 %v1509_v12 }
  0x30   : > { %1394 = vmatprep.subr.bf16.mxu0 %v1649_v1  ;;  %1443 = vmatpush3.bf16.msra.mxu1 %v1512_v30 }
  0x33   : > { %1395 = vmatpush3.bf16.msra.mxu0 %v1510_v15 }
  0x34   : > { %1396 = vmatprep.subr.bf16.mxu0 %v1649_v1 }
  0x36   : > { %1369 = vmatmul.mubr.msk.bf16.gmra.mrb[12].mxu0 %vm442_vm1, %v423_v19 }
  0x37   : > { %1372 = vmatprep.mubr.msk.bf16.mxu0 %vm1650_vm0, %v1649_v1  ;;  %1397 = vmatpush3.bf16.msra.mxu0 %v1511_v29 }
  0x38   : > { %1398 = vmatprep.subr.bf16.mxu0 %v1649_v1 }
  0x3b   : > { %1399 = vmatpush3.bf16.msra.mxu0 %v1512_v30 }
  0x3e   : > { %1373 = vmatmul.mubr.msk.bf16.gmra.mrb[16].mxu0 %vm442_vm1, %v424_v22 }
  0x3f   : > { %1376 = vmatprep.mubr.msk.bf16.mxu0 %vm1650_vm0, %v1649_v1 }
  0x46   : > { %1377 = vmatmul.mubr.msk.bf16.gmra.mrb[20].mxu0 %vm442_vm1, %v425_v25 }
  0x47   : > { %1380 = vmatprep.mubr.msk.bf16.mxu0 %vm1650_vm0, %v1649_v1 }
  0x4e   : > { %1381 = vmatmul.mubr.msk.bf16.gmra.mrb[24].mxu0 %vm442_vm1, %v426_v28 }
  0x4f   : > { %1400 = vmatprep.mubr.msk.bf16.mxu0 %vm1650_vm0, %v1649_v1 }
  0xf1   : > { %v498_v32 = vpop.f32.mrb[0].mxu0 }
  0xf2   : > { %v499_v33 = vadd.f32 %v1854_v31, %v498_v32  ;;  %v1358_v34 = vpop.f32.mrb[1].mxu0 }
  0xf3   : > { %v501_v35 = vpop.f32.mrb[2].mxu0 }
  0xf4   : > { %v502_v36 = vadd.f32 %v1854_v31, %v501_v35  ;;  %v1359_v37 = vpop.f32.mrb[3].mxu0  ;;  %v553_v38 = vmax.f32 %v499_v33, 0.0  ;;  %v1883_v33 = vld [vmem:[%s2042_s4] ss:$0 sm:$0xff] }
  0xf6   : > { %v554_v39 = vmax.f32 %v502_v36, 0.0 }
  0xf8   : > { %v581_v40 = vpack.c.bf16 %v554_v39, %v553_v38 }
  0xf9   : > { %v506_v41 = vpop.f32.mrb[4].mxu0 }
  0xfa   : > { %v507_v42 = vadd.f32 %v1854_v31, %v506_v41  ;;  %v1362_v43 = vpop.f32.mrb[5].mxu0  ;;  %1401 = vmatmul.mubr.bf16.vlgmr.msra.gmra.mrb[28].mxu0 %v581_v40 }
  0xfb   : > { %v509_v44 = vpop.f32.mrb[6].mxu0 }
  0xfc   : > { %v510_v45 = vadd.f32 %v1854_v31, %v509_v44  ;;  %v1363_v46 = vpop.f32.mrb[7].mxu0  ;;  %v555_v47 = vmax.f32 %v507_v42, 0.0 }
  0xfe   : > { %v556_v48 = vmax.f32 %v510_v45, 0.0 }
 0x100   : > { %v582_v49 = vpack.c.bf16 %v556_v48, %v555_v47 }
 0x101   : > { %v514_v50 = vpop.f32.mrb[8].mxu0 }
 0x102   : > { %v515_v51 = vadd.f32 %v1854_v31, %v514_v50  ;;  %v1366_v52 = vpop.f32.mrb[9].mxu0  ;;  %1405 = vmatmul.mubr.bf16.vlgmr.msra.gmra.mrb[0].mxu1 %v582_v49 }
 0x103   : > { %v517_v53 = vpop.f32.mrb[10].mxu0  ;;  %1408 = vmatprep.mubr.msk.bf16.mxu1 %vm1650_vm0, %v1649_v1 }
 0x104   : > { %v518_v54 = vadd.f32 %v1854_v31, %v517_v53  ;;  %v1367_v55 = vpop.f32.mrb[11].mxu0  ;;  %v557_v56 = vmax.f32 %v515_v51, 0.0 }
 0x106   : > { %v558_v57 = vmax.f32 %v518_v54, 0.0 }
 0x108   : > { %v583_v58 = vpack.c.bf16 %v558_v57, %v557_v56 }
 0x109   : > { %v522_v59 = vpop.f32.mrb[12].mxu0 }
 0x10a   : > { %v523_v60 = vadd.f32 %v1854_v31, %v522_v59  ;;  %v1370_v61 = vpop.f32.mrb[13].mxu0  ;;  %1409 = vmatmul.mubr.bf16.gmra.mrb[4].mxu1 %v583_v58 }
 0x10b   : > { %v525_v62 = vpop.f32.mrb[14].mxu0  ;;  %1412 = vmatprep.mubr.msk.bf16.mxu1 %vm1650_vm0, %v1649_v1 }
 0x10c   : > { %v526_v63 = vadd.f32 %v1854_v31, %v525_v62  ;;  %v1371_v0 = vpop.f32.mrb[15].mxu0  ;;  %v559_v2 = vmax.f32 %v523_v60, 0.0 }
 0x10e   : > { %v560_v3 = vmax.f32 %v526_v63, 0.0 }
 0x110   : > { %v584_v4 = vpack.c.bf16 %v560_v3, %v559_v2 }
 0x111   : > { %v530_v5 = vpop.f32.mrb[16].mxu0 }
 0x112   : > { %v531_v6 = vadd.f32 %v1854_v31, %v530_v5  ;;  %v1374_v7 = vpop.f32.mrb[17].mxu0  ;;  %1413 = vmatmul.mubr.bf16.gmra.mrb[8].mxu1 %v584_v4 }
 0x113   : > { %v533_v8 = vpop.f32.mrb[18].mxu0  ;;  %1416 = vmatprep.mubr.msk.bf16.mxu1 %vm1650_vm0, %v1649_v1 }
 0x114   : > { %v534_v9 = vadd.f32 %v1854_v31, %v533_v8  ;;  %v1375_v10 = vpop.f32.mrb[19].mxu0  ;;  %v561_v11 = vmax.f32 %v531_v6, 0.0 }
 0x116   : > { %v562_v12 = vmax.f32 %v534_v9, 0.0 }
 0x118   : > { %v585_v13 = vpack.c.bf16 %v562_v12, %v561_v11 }
 0x119   : > { %v538_v14 = vpop.f32.mrb[20].mxu0 }
 0x11a   : > { %v539_v15 = vadd.f32 %v1854_v31, %v538_v14  ;;  %v1378_v16 = vpop.f32.mrb[21].mxu0  ;;  %1417 = vmatmul.mubr.bf16.gmra.mrb[12].mxu1 %v585_v13 }
 0x11b   : > { %v541_v17 = vpop.f32.mrb[22].mxu0  ;;  %1420 = vmatprep.mubr.msk.bf16.mxu1 %vm1650_vm0, %v1649_v1 }
 0x11c   : > { %v542_v18 = vadd.f32 %v1854_v31, %v541_v17  ;;  %v1379_v19 = vpop.f32.mrb[23].mxu0  ;;  %v563_v20 = vmax.f32 %v539_v15, 0.0 }
 0x11e   : > { %v564_v21 = vmax.f32 %v542_v18, 0.0 }
 0x120   : > { %v586_v22 = vpack.c.bf16 %v564_v21, %v563_v20 }
 0x121   : > { %v546_v23 = vpop.f32.mrb[24].mxu0 }
 0x122   : > { %v547_v24 = vadd.f32 %v1854_v31, %v546_v23  ;;  %v1382_v25 = vpop.f32.mrb[25].mxu0  ;;  %1421 = vmatmul.mubr.bf16.gmra.mrb[16].mxu1 %v586_v22 }
 0x123   : > { %v549_v26 = vpop.f32.mrb[26].mxu0  ;;  %1424 = vmatprep.mubr.msk.bf16.mxu1 %vm1650_vm0, %v1649_v1 }
 0x124   : > { %v550_v27 = vadd.f32 %v1854_v31, %v549_v26  ;;  %v1383_v28 = vpop.f32.mrb[27].mxu0  ;;  %v565_v29 = vmax.f32 %v547_v24, 0.0  ;;  %v1892_v31 = vld [vmem:[%s2043_s5] ss:$0 sm:$0xff] }
 0x126   : > { %v566_v30 = vmax.f32 %v550_v27, 0.0 }
 0x128   : > { %v587_v32 = vpack.c.bf16 %v566_v30, %v565_v29 }
 0x12a   : > { %1425 = vmatmul.mubr.bf16.gmra.mrb[20].mxu1 %v587_v32 }
 0x1cd   : > { %v686_v34 = vpop.f32.mrb[28].mxu0 }
 0x1ce   : > { %v793_v35 = vadd.f32 %v1883_v33, %v686_v34  ;;  %v1402_v36 = vpop.f32.mrb[29].mxu0 }
 0x1cf   : > { %v689_v1 = vpop.f32.mrb[30].mxu0 }
 0x1d0   : > { %v807_v37 = vmax.f32 %v793_v35, 0.0  ;;  %v794_v38 = vadd.f32 %v1883_v33, %v689_v1  ;;  %v1403_v39 = vpop.f32.mrb[31].mxu0 }
 0x1d2   : > { %v808_v40 = vmax.f32 %v794_v38, 0.0  ;;  %v828_v41 = vmul.f32 %v1892_v31, %v807_v37 }
 0x1d4   : > { %v1293_v42 = vpack.c.bf16 %v808_v40, %v807_v37  ;;  %842 = vadd.xlane.f32.xlu0 %v828_v41  ;;  %v829_v46 = vmul.f32 %v1892_v31, %v808_v40 }
 0x1d5   : > { %v694_v43 = vpop.f32.mrb[0].mxu1 }
 0x1d6   : > { %1294 = vst [vmem:[%s1896_s6] sm:$0xff] %v1293_v42   ;;  %v795_v44 = vadd.f32 %v1883_v33, %v694_v43  ;;  %v1406_v45 = vpop.f32.mrb[1].mxu1 }
 0x1d7   : > { %v697_v47 = vpop.f32.mrb[2].mxu1 }
 0x1d8   : > { %v809_v48 = vmax.f32 %v795_v44, 0.0  ;;  %v796_v49 = vadd.f32 %v1883_v33, %v697_v47  ;;  %v1407_v50 = vpop.f32.mrb[3].mxu1  ;;  %844 = vadd.xlane.f32.xlu0 %v829_v46 }
 0x1da   : > { %v810_v51 = vmax.f32 %v796_v49, 0.0  ;;  %v830_v52 = vmul.f32 %v1892_v31, %v809_v48 }
 0x1dc   : > { %v1298_v53 = vpack.c.bf16 %v810_v51, %v809_v48  ;;  %846 = vadd.xlane.f32.xlu1 %v830_v52  ;;  %v831_v57 = vmul.f32 %v1892_v31, %v810_v51 }
 0x1dd   : > { %v702_v54 = vpop.f32.mrb[4].mxu1 }
 0x1de   : > { %1325 = vst [vmem:[%s1896_s6 + $0x8] sm:$0xff] %v1298_v53   ;;  %v797_v55 = vadd.f32 %v1883_v33, %v702_v54  ;;  %v1410_v56 = vpop.f32.mrb[5].mxu1 }
 0x1df   : > { %v705_v58 = vpop.f32.mrb[6].mxu1 }
 0x1e0   : > { %v811_v59 = vmax.f32 %v797_v55, 0.0  ;;  %v798_v60 = vadd.f32 %v1883_v33, %v705_v58  ;;  %848 = vadd.xlane.f32.xlu1 %v831_v57  ;;  %v1411_v61 = vpop.f32.mrb[7].mxu1 }
 0x1e2   : > { %v812_v62 = vmax.f32 %v798_v60, 0.0  ;;  %v832_v63 = vmul.f32 %v1892_v31, %v811_v59 }
 0x1e4   : > { %v1303_v0 = vpack.c.bf16 %v812_v62, %v811_v59  ;;  %850 = vadd.xlane.f32.xlu0 %v832_v63  ;;  %v833_v2 = vmul.f32 %v1892_v31, %v812_v62 }
 0x1e5   : > { %v710_v3 = vpop.f32.mrb[8].mxu1 }
 0x1e6   : > { %1326 = vst [vmem:[%s1896_s6 + $0x10] sm:$0xff] %v1303_v0   ;;  %v799_v4 = vadd.f32 %v1883_v33, %v710_v3  ;;  %852 = vadd.xlane.f32.xlu1 %v833_v2  ;;  %v1414_v5 = vpop.f32.mrb[9].mxu1 }
 0x1e7   : > { %v713_v6 = vpop.f32.mrb[10].mxu1 }
 0x1e8   : > { %v813_v7 = vmax.f32 %v799_v4, 0.0  ;;  %v800_v8 = vadd.f32 %v1883_v33, %v713_v6  ;;  %v1415_v9 = vpop.f32.mrb[11].mxu1 }
 0x1ea   : > { %v814_v10 = vmax.f32 %v800_v8, 0.0  ;;  %v834_v11 = vmul.f32 %v1892_v31, %v813_v7 }
 0x1ec   : > { %v1308_v12 = vpack.c.bf16 %v814_v10, %v813_v7  ;;  %854 = vadd.xlane.f32.xlu0 %v834_v11  ;;  %v835_v13 = vmul.f32 %v1892_v31, %v814_v10 }
 0x1ed   : > { %v718_v14 = vpop.f32.mrb[12].mxu1 }
 0x1ee   : > { %1327 = vst [vmem:[%s1896_s6 + $0x18] sm:$0xff] %v1308_v12   ;;  %v801_v15 = vadd.f32 %v1883_v33, %v718_v14  ;;  %856 = vadd.xlane.f32.xlu1 %v835_v13  ;;  %v1418_v16 = vpop.f32.mrb[13].mxu1 }
 0x1ef   : > { %v721_v17 = vpop.f32.mrb[14].mxu1 }
 0x1f0   : > { %v815_v18 = vmax.f32 %v801_v15, 0.0  ;;  %v802_v19 = vadd.f32 %v1883_v33, %v721_v17  ;;  %v1419_v20 = vpop.f32.mrb[15].mxu1 }
 0x1f2   : > { %v816_v21 = vmax.f32 %v802_v19, 0.0  ;;  %v836_v22 = vmul.f32 %v1892_v31, %v815_v18 }
 0x1f4   : > { %v1313_v23 = vpack.c.bf16 %v816_v21, %v815_v18  ;;  %858 = vadd.xlane.f32.xlu0 %v836_v22  ;;  %v837_v24 = vmul.f32 %v1892_v31, %v816_v21 }
 0x1f5   : > { %v726_v25 = vpop.f32.mrb[16].mxu1 }
 0x1f6   : > { %1328 = vst [vmem:[%s1896_s6 + $0x20] sm:$0xff] %v1313_v23   ;;  %v803_v26 = vadd.f32 %v1883_v33, %v726_v25  ;;  %860 = vadd.xlane.f32.xlu1 %v837_v24  ;;  %v1422_v27 = vpop.f32.mrb[17].mxu1 }
 0x1f7   : > { %v729_v28 = vpop.f32.mrb[18].mxu1 }
 0x1f8   : > { %v817_v29 = vmax.f32 %v803_v26, 0.0  ;;  %v804_v30 = vadd.f32 %v1883_v33, %v729_v28  ;;  %v1423_v32 = vpop.f32.mrb[19].mxu1 }
 0x1fa   : > { %v818_v34 = vmax.f32 %v804_v30, 0.0  ;;  %v838_v35 = vmul.f32 %v1892_v31, %v817_v29 }
 0x1fc   : > { %v1318_v36 = vpack.c.bf16 %v818_v34, %v817_v29  ;;  %862 = vadd.xlane.f32.xlu0 %v838_v35  ;;  %v839_v1 = vmul.f32 %v1892_v31, %v818_v34 }
 0x1fd   : > { %v734_v37 = vpop.f32.mrb[20].mxu1 }
 0x1fe   : > { %1329 = vst [vmem:[%s1896_s6 + $0x28] sm:$0xff] %v1318_v36   ;;  %v805_v38 = vadd.f32 %v1883_v33, %v734_v37  ;;  %864 = vadd.xlane.f32.xlu1 %v839_v1  ;;  %v1426_v39 = vpop.f32.mrb[21].mxu1 }
 0x1ff   : > { %v737_v40 = vpop.f32.mrb[22].mxu1 }
 0x200   : > { %v819_v41 = vmax.f32 %v805_v38, 0.0  ;;  %v806_v42 = vadd.f32 %v1883_v33, %v737_v40  ;;  %v1427_v43 = vpop.f32.mrb[23].mxu1 }
 0x202   : > { %v820_v44 = vmax.f32 %v806_v42, 0.0  ;;  %v840_v45 = vmul.f32 %v1892_v31, %v819_v41 }
 0x204   : > { %v1323_v46 = vpack.c.bf16 %v820_v44, %v819_v41  ;;  %866 = vadd.xlane.f32.xlu0 %v840_v45  ;;  %v841_v47 = vmul.f32 %v1892_v31, %v820_v44 }
 0x206   : > { %1330 = vst [vmem:[%s1896_s6 + $0x30] sm:$0xff] %v1323_v46   ;;  %868 = vadd.xlane.f32.xlu1 %v841_v47 }
 0x207   : > { %1582 = shalt.err (!%p1579_p5)
}
 0x208   : > { %s1583_s24 = scalar_lea.hbm %s1935_s21, 896  ;;  %s1587_s13 = scalar_lea.hbm %s2046_s8, 1792 }
 0x209   : > { %p1584_p6 = scmp.ne.s32.totalorder %s1935_s21, %s1583_s24  ;;  %p1588_p10 = scmp.lt.u32.totalorder %s1935_s21, %s2046_s8 }
 0x20a   : > { %p1589_p11 = scmp.lt.u32.totalorder %s1587_s13, %s1583_s24  ;;  %p1591_p13 = scmp.lt.u32.totalorder %s1583_s24, %s1935_s21 }
 0x20b   : > { %p1585_p7 = pnand %p1584_p6, %p1742_p4 }
 0x20c   : > { %p1590_p12 = por %p1589_p11, %p1588_p10 }
 0x20d   : > { %p1586_p9 = pneg %p1585_p7 }
 0x20e   : > { %p1592_p0 = por %p1591_p13, %p1590_p12 }
 0x210   : > { %p1593_p1 = pnand %p1592_p0, %p1586_p9 }
 0x212   : > { %1596 = shalt.err (!%p1593_p1)
}
 0x213   : > { %s1652_s25 = smov 64   ;;  %s1653_s26 = smov 4   ;;  %vm970_vm2 = vcmask 7168  }
 0x214   : > { %1445 = dma.vmem_to_hbm [thread:$0]  (%p1742_p4), %s1937_s17, 896, %s1935_s21, %s1941_s23, %s1652_s25, %s1652_s25, %s1653_s26  }
 0x215   : > { %s870_s28 = sld [smem:[#allocation3]]  ;;  %s1979_s21 = scalar_lea.vmem %s2045_s7, %s1223_s27 }
 0x21b   : > { %v1965_v33 = vstv %s870_s28 }
 0x261   : > { %v843_v31 = vpop.xlane.xlu0 %842 }
 0x262   : > { %v872_v48 = vadd.f32 %v1965_v33, %v843_v31 }
 0x264   : > { %v1244_v49 = vmul.f32 -1.442695, %v872_v48 }
 0x265   : > { %v845_v50 = vpop.xlane.xlu0 %844 }
 0x266   : > { %1513 = vpow2.f32 %v1244_v49  ;;  %v873_v51 = vadd.f32 %v1965_v33, %v845_v50 }
 0x268   : > { %v1245_v52 = vmul.f32 -1.442695, %v873_v51 }
 0x269   : > { %v847_v53 = vpop.xlane.xlu1 %846 }
 0x26a   : > { %1515 = vpow2.f32 %v1245_v52  ;;  %v874_v54 = vadd.f32 %v1965_v33, %v847_v53 }
 0x26c   : > { %v1246_v55 = vmul.f32 -1.442695, %v874_v54 }
 0x26d   : > { %v849_v56 = vpop.xlane.xlu1 %848 }
 0x26e   : > { %1517 = vpow2.f32 %v1246_v55  ;;  %v875_v57 = vadd.f32 %v1965_v33, %v849_v56 }
 0x270   : > { %v1514_v58 = vpop.eup %1513  ;;  %v1247_v59 = vmul.f32 -1.442695, %v875_v57 }
 0x271   : > { %v928_v60 = vadd.f32 1.0, %v1514_v58  ;;  %v851_v61 = vpop.xlane.xlu0 %850 }
 0x272   : > { %1519 = vpow2.f32 %v1247_v59  ;;  %v876_v62 = vadd.f32 %v1965_v33, %v851_v61 }
 0x273   : > { %1521 = vrcp.f32 %v928_v60  ;;  %v853_v63 = vpop.xlane.xlu1 %852 }
 0x274   : > { %v1516_v0 = vpop.eup %1515  ;;  %v1248_v2 = vmul.f32 -1.442695, %v876_v62  ;;  %v877_v3 = vadd.f32 %v1965_v33, %v853_v63 }
 0x275   : > { %v929_v4 = vadd.f32 1.0, %v1516_v0 }
 0x276   : > { %1523 = vpow2.f32 %v1248_v2  ;;  %v1249_v5 = vmul.f32 -1.442695, %v877_v3 }
 0x277   : > { %1525 = vrcp.f32 %v929_v4 }
 0x278   : > { %v1518_v6 = vpop.eup %1517  ;;  %1527 = vpow2.f32 %v1249_v5 }
 0x279   : > { %v930_v7 = vadd.f32 1.0, %v1518_v6  ;;  %v855_v8 = vpop.xlane.xlu0 %854 }
 0x27a   : > { %v878_v9 = vadd.f32 %v1965_v33, %v855_v8 }
 0x27b   : > { %1529 = vrcp.f32 %v930_v7  ;;  %v857_v10 = vpop.xlane.xlu1 %856 }
 0x27c   : > { %v1520_v11 = vpop.eup %1519  ;;  %v1250_v12 = vmul.f32 -1.442695, %v878_v9  ;;  %v879_v13 = vadd.f32 %v1965_v33, %v857_v10 }
 0x27d   : > { %v1522_v14 = vpop.eup %1521  ;;  %v931_v15 = vadd.f32 1.0, %v1520_v11 }
 0x27e   : > { %971 = vst.msk [vmem:[%s1979_s21] sm:$0xff] %vm970_vm2, %v1522_v14  ;;  %1531 = vpow2.f32 %v1250_v12  ;;  %v1251_v16 = vmul.f32 -1.442695, %v879_v13 }
 0x27f   : > { %1533 = vrcp.f32 %v931_v15 }
 0x280   : > { %v1524_v17 = vpop.eup %1523  ;;  %1535 = vpow2.f32 %v1251_v16 }
 0x281   : > { %v1526_v18 = vpop.eup %1525  ;;  %v932_v19 = vadd.f32 1.0, %v1524_v17  ;;  %v859_v20 = vpop.xlane.xlu0 %858 }
 0x282   : > { %v1528_v21 = vpop.eup %1527  ;;  %972 = vst.msk [vmem:[%s1979_s21 + $0x8] sm:$0xff] %vm970_vm2, %v1526_v18  ;;  %v880_v22 = vadd.f32 %v1965_v33, %v859_v20 }
 0x283   : > { %1537 = vrcp.f32 %v932_v19  ;;  %v933_v23 = vadd.f32 1.0, %v1528_v21  ;;  %v861_v24 = vpop.xlane.xlu1 %860 }
 0x284   : > { %v1252_v25 = vmul.f32 -1.442695, %v880_v22  ;;  %v881_v26 = vadd.f32 %v1965_v33, %v861_v24 }
 0x285   : > { %v1530_v27 = vpop.eup %1529  ;;  %1539 = vrcp.f32 %v933_v23 }
 0x286   : > { %973 = vst.msk [vmem:[%s1979_s21 + $0x10] sm:$0xff] %vm970_vm2, %v1530_v27  ;;  %1541 = vpow2.f32 %v1252_v25  ;;  %v1253_v28 = vmul.f32 -1.442695, %v881_v26 }
 0x288   : > { %v1532_v29 = vpop.eup %1531  ;;  %1543 = vpow2.f32 %v1253_v28 }
 0x289   : > { %v1534_v30 = vpop.eup %1533  ;;  %v934_v32 = vadd.f32 1.0, %v1532_v29  ;;  %v863_v34 = vpop.xlane.xlu0 %862 }
 0x28a   : > { %v1536_v35 = vpop.eup %1535  ;;  %974 = vst.msk [vmem:[%s1979_s21 + $0x18] sm:$0xff] %vm970_vm2, %v1534_v30  ;;  %v882_v36 = vadd.f32 %v1965_v33, %v863_v34 }
 0x28b   : > { %1545 = vrcp.f32 %v934_v32  ;;  %v935_v1 = vadd.f32 1.0, %v1536_v35  ;;  %v865_v37 = vpop.xlane.xlu1 %864 }
 0x28c   : > { %v1254_v38 = vmul.f32 -1.442695, %v882_v36  ;;  %v883_v39 = vadd.f32 %v1965_v33, %v865_v37 }
 0x28d   : > { %v1538_v40 = vpop.eup %1537  ;;  %1547 = vrcp.f32 %v935_v1 }
 0x28e   : > { %975 = vst.msk [vmem:[%s1979_s21 + $0x20] sm:$0xff] %vm970_vm2, %v1538_v40  ;;  %1549 = vpow2.f32 %v1254_v38  ;;  %v1255_v41 = vmul.f32 -1.442695, %v883_v39 }
 0x28f   : > { %v1540_v42 = vpop.eup %1539 }
 0x290   : > { %v1542_v43 = vpop.eup %1541  ;;  %976 = vst.msk [vmem:[%s1979_s21 + $0x28] sm:$0xff] %vm970_vm2, %v1540_v42  ;;  %1551 = vpow2.f32 %v1255_v41 }
 0x291   : > { %v936_v44 = vadd.f32 1.0, %v1542_v43  ;;  %v867_v45 = vpop.xlane.xlu0 %866 }
 0x292   : > { %v1544_v46 = vpop.eup %1543  ;;  %v884_v47 = vadd.f32 %v1965_v33, %v867_v45 }
 0x293   : > { %1553 = vrcp.f32 %v936_v44  ;;  %v937_v31 = vadd.f32 1.0, %v1544_v46  ;;  %v869_v48 = vpop.xlane.xlu1 %868 }
 0x294   : > { %v1256_v49 = vmul.f32 -1.442695, %v884_v47  ;;  %v885_v50 = vadd.f32 %v1965_v33, %v869_v48 }
 0x295   : > { %v1546_v51 = vpop.eup %1545  ;;  %1555 = vrcp.f32 %v937_v31 }
 0x296   : > { %977 = vst.msk [vmem:[%s1979_s21 + $0x30] sm:$0xff] %vm970_vm2, %v1546_v51  ;;  %1557 = vpow2.f32 %v1256_v49  ;;  %v1257_v52 = vmul.f32 -1.442695, %v885_v50 }
 0x297   : > { %v1548_v53 = vpop.eup %1547 }
 0x298   : > { %v1550_v54 = vpop.eup %1549  ;;  %978 = vst.msk [vmem:[%s1979_s21 + $0x38] sm:$0xff] %vm970_vm2, %v1548_v53  ;;  %1559 = vpow2.f32 %v1257_v52 }
 0x299   : > { %v938_v55 = vadd.f32 1.0, %v1550_v54 }
 0x29a   : > { %v1552_v56 = vpop.eup %1551 }
 0x29b   : > { %1561 = vrcp.f32 %v938_v55  ;;  %v939_v57 = vadd.f32 1.0, %v1552_v56 }
 0x29d   : > { %v1554_v33 = vpop.eup %1553  ;;  %1563 = vrcp.f32 %v939_v57 }
 0x29e   : > { %979 = vst.msk [vmem:[%s1979_s21 + $0x40] sm:$0xff] %vm970_vm2, %v1554_v33 }
 0x29f   : > { %v1556_v58 = vpop.eup %1555 }
 0x2a0   : > { %v1558_v59 = vpop.eup %1557  ;;  %980 = vst.msk [vmem:[%s1979_s21 + $0x48] sm:$0xff] %vm970_vm2, %v1556_v58 }
 0x2a1   : > { %v940_v60 = vadd.f32 1.0, %v1558_v59 }
 0x2a2   : > { %v1560_v61 = vpop.eup %1559 }
 0x2a3   : > { %1565 = vrcp.f32 %v940_v60  ;;  %v941_v62 = vadd.f32 1.0, %v1560_v61 }
 0x2a5   : > { %v1562_v63 = vpop.eup %1561  ;;  %1567 = vrcp.f32 %v941_v62 }
 0x2a6   : > { %981 = vst.msk [vmem:[%s1979_s21 + $0x50] sm:$0xff] %vm970_vm2, %v1562_v63 }
 0x2a7   : > { %v1564_v0 = vpop.eup %1563 }
 0x2a8   : > { %982 = vst.msk [vmem:[%s1979_s21 + $0x58] sm:$0xff] %vm970_vm2, %v1564_v0 }
 0x2ad   : > { %v1566_v2 = vpop.eup %1565 }
 0x2ae   : > { %983 = vst.msk [vmem:[%s1979_s21 + $0x60] sm:$0xff] %vm970_vm2, %v1566_v2 }
 0x2af   : > { %v1568_v3 = vpop.eup %1567 }
 0x2b0   : > { %984 = vst.msk [vmem:[%s1979_s21 + $0x68] sm:$0xff] %vm970_vm2, %v1568_v3 }
 0x2b1 PF: > { %p1451_p4 = scmp.ge.s32.totalorder %s1647_s12, 2  ;;  %s1101_s22 = sand.u32 1, %s1627_s29  }
 0x2b2   : > { %s1102_s27 = scalar_lea.sflag [#allocation5], %s1101_s22 }
 0x2b3   : > { %p1448_p2 = pnand %p1451_p4, %p1749_p8 }
 0x2b5   : > { %1622 = dma.done.wait (!%p1448_p2), %s1102_s27, 896  }
 0x2b6   : > { %1624 = vsyncadd (!%p1448_p2), %s1102_s27, 4294966400  ;;  %s23_s12 = sadd.s32 1, %s1647_s12   ;;  %s2049_s29 = smov %s1631_s30 }
 0x2b7   : > { %p20_p3 = scmp.ge.s32.totalorder %s23_s12, 4   ;;  %s2050_s30 = smov %s1635_s9 }
 0x2b8   : > { %s2051_s9 = smov %s1755_s19  ;;  %s2052_s10 = smov %s1643_s11 }
 0x2b9   : > { %s2053_s11 = smov %s2055_s14  ;;  %22 = sbr.rel (!%p20_p3) target bundleno = 6 (0x6), region = 112 }
 0x2c0   :  { %1107 = vsyncpa [#allocation5], 1 }
 0x2c1   :  { %1109 = vsyncpa [#allocation5 + $0x1], 1 }

</bundles_post_ra>
